<compile_context>
chip_gen: v6e
topology: v6e:2x2x1
jax: 0.10.0
libtpu: 0.0.40
codegen_flags: <defaults>
</compile_context>

<pallas_src>
import jax
import jax.numpy as jnp
from jax.experimental import pallas as pl
from jax.experimental.pallas import tpu as pltpu

LANE = 128
SUB = 8  # sublanes per f32 vreg


def _discrete_exp_kernel(obsb_ref, alpha_ref, t_ref, tpf_ref, beta_ref, out_ref):
    # All vector refs are (SUB, block_lanes) f32; beta is a scalar in SMEM.
    beta = beta_ref[0]
    decay = jnp.exp(-beta * jnp.abs(t_ref[...] - tpf_ref[...]))
    out_ref[...] = alpha_ref[...] * obsb_ref[...] * decay


def discrete_exponential_kernel(tp, sp, t, s, obs, alpha, beta, *, block_lanes=None):
    """
    Args:
      tp, sp, s: [B] integer arrays (time / space indices)
      t:         [B] float array (time values)
      obs:       [n_time, n_space] counts (cast to f32)
      alpha:     [n_space, n_space] f32
      beta:      [1] f32
    Returns:
      val: [B] f32
    """
    B = tp.shape[0]
    T, S = obs.shape
    assert alpha.shape == (S, S)

    beta_f = beta.astype(jnp.float32)

    # Gathers done by XLA (wrapper side); beta folded once into the tiny table.
    obs_scaled = obs.astype(jnp.float32) * beta_f[0]          # (T, S), tiny
    obs_g = obs_scaled[tp, sp]                                # [B] f32, already * beta
    alpha_g = alpha.astype(jnp.float32)[sp, s]                # [B] f32

    tpf = tp.astype(jnp.float32)
    tf = t.astype(jnp.float32)

    # Lane/sublane-dense batch blocking: batch lives on an (8, lanes) slab.
    if block_lanes is None:
        block_lanes = min(512, LANE * pl.cdiv(B, SUB * LANE))
        block_lanes = max(block_lanes, LANE)
    assert block_lanes % LANE == 0

    tile = SUB * block_lanes
    b_pad = tile * pl.cdiv(B, tile)
    lanes_pad = b_pad // SUB
    grid = (lanes_pad // block_lanes,)

    def pad2(x):
        # Pad with zeros (padded lanes compute garbage that is sliced off).
        return jnp.pad(x, (0, b_pad - B)).reshape(SUB, lanes_pad)

    obs2 = pad2(obs_g)
    alpha2 = pad2(alpha_g)
    t2 = pad2(tf)
    tpf2 = pad2(tpf)
    beta1 = beta_f.reshape(1)

    vec_spec = pl.BlockSpec((SUB, block_lanes), lambda i: (0, i))
    beta_spec = pl.BlockSpec((1,), lambda i: (0,),
                             memory_space=pltpu.MemorySpace.SMEM)

    out = pl.pallas_call(
        _discrete_exp_kernel,
        out_shape=jax.ShapeDtypeStruct((SUB, lanes_pad), jnp.float32),
        grid=grid,
        in_specs=[vec_spec, vec_spec, vec_spec, vec_spec, beta_spec],
        out_specs=vec_spec,
        compiler_params=pltpu.CompilerParams(
            dimension_semantics=("parallel",)),
    )(obs2, alpha2, t2, tpf2, beta1)

    return out.reshape(b_pad)[:B]


if __name__ == "__main__":
    key = jax.random.PRNGKey(0)
    k_obs, k_alpha, k_tp, k_sp, k_s, k_t = jax.random.split(key, 6)

    batch = 8
    n_time = 16
    n_space = 8

    # Deterministic parameter / buffer init (module defaults: alpha ~ eye, beta = ones)
    obs = jax.random.randint(k_obs, (n_time, n_space), 0, 5, dtype=jnp.int32)
    alpha = jnp.eye(n_space, dtype=jnp.float32) \
        + 0.1 * jax.random.uniform(k_alpha, (n_space, n_space), dtype=jnp.float32)
    beta = jnp.ones((1,), dtype=jnp.float32) * 0.7

    # Forward inputs: four [batch] tensors
    tp = jax.random.randint(k_tp, (batch,), 0, n_time, dtype=jnp.int32)
    sp = jax.random.randint(k_sp, (batch,), 0, n_space, dtype=jnp.int32)
    s = jax.random.randint(k_s, (batch,), 0, n_space, dtype=jnp.int32)
    t = jax.random.uniform(k_t, (batch,), dtype=jnp.float32) * n_time

    val = discrete_exponential_kernel(tp, sp, t, s, obs, alpha, beta)
    val = jax.block_until_ready(val)

    # Pure-JAX reference (same semantics as the PyTorch forward)
    obs_ref = obs.astype(jnp.float32)[tp, sp]
    alpha_ref = alpha[sp, s]
    ref = alpha_ref * obs_ref * beta[0] * jnp.exp(-beta[0] * jnp.abs(t - tp.astype(jnp.float32)))

    assert val.shape == (batch,)
    assert jnp.allclose(val, ref, rtol=1e-5, atol=1e-5)
    print("KERNEL_OK")
</pallas_src>

<mosaic_0001>
module attributes {stable_mosaic.version = 11 : i64} {
  func.func @_discrete_exp_kernel(%arg0: i32, %arg1: memref<8x128xf32, #tpu.memory_space<vmem>>, %arg2: memref<8x128xf32, #tpu.memory_space<vmem>>, %arg3: memref<8x128xf32, #tpu.memory_space<vmem>>, %arg4: memref<8x128xf32, #tpu.memory_space<vmem>>, %arg5: memref<1xf32, #tpu.memory_space<smem>>, %arg6: memref<8x128xf32, #tpu.memory_space<vmem>>) attributes {dimension_semantics = [#tpu.dimension_semantics<parallel>], iteration_bounds = array<i64: 1>, scalar_prefetch = 0 : i64, scratch_operands = 0 : i64, tpu.core_type = #tpu.core_type<tc>, window_params = [{transform_indices = @transform_0, window_bounds = array<i64: 8, 128>}, {transform_indices = @transform_1, window_bounds = array<i64: 8, 128>}, {transform_indices = @transform_2, window_bounds = array<i64: 8, 128>}, {transform_indices = @transform_3, window_bounds = array<i64: 8, 128>}, {transform_indices = @transform_4, window_bounds = array<i64: 1>}, {transform_indices = @transform_5, window_bounds = array<i64: 8, 128>}]} {
    %c0 = arith.constant 0 : index
    %0 = memref.load %arg5[%c0] : memref<1xf32, #tpu.memory_space<smem>>
    %cst = arith.constant 0.000000e+00 : f32
    %1 = arith.subf %cst, %0 : f32
    %c0_0 = arith.constant 0 : index
    %c0_1 = arith.constant 0 : index
    %2 = vector.load %arg3[%c0_0, %c0_1] : memref<8x128xf32, #tpu.memory_space<vmem>>, vector<8x128xf32>
    %c0_2 = arith.constant 0 : index
    %c0_3 = arith.constant 0 : index
    %3 = vector.load %arg4[%c0_2, %c0_3] : memref<8x128xf32, #tpu.memory_space<vmem>>, vector<8x128xf32>
    %4 = arith.subf %2, %3 : vector<8x128xf32>
    %5 = math.absf %4 : vector<8x128xf32>
    %6 = vector.broadcast %1 : f32 to vector<8x128xf32>
    %7 = arith.mulf %6, %5 : vector<8x128xf32>
    %8 = math.exp %7 : vector<8x128xf32>
    %c0_4 = arith.constant 0 : index
    %c0_5 = arith.constant 0 : index
    %9 = vector.load %arg2[%c0_4, %c0_5] : memref<8x128xf32, #tpu.memory_space<vmem>>, vector<8x128xf32>
    %c0_6 = arith.constant 0 : index
    %c0_7 = arith.constant 0 : index
    %10 = vector.load %arg1[%c0_6, %c0_7] : memref<8x128xf32, #tpu.memory_space<vmem>>, vector<8x128xf32>
    %11 = arith.mulf %9, %10 : vector<8x128xf32>
    %12 = arith.mulf %11, %8 : vector<8x128xf32>
    %c0_8 = arith.constant 0 : index
    %c0_9 = arith.constant 0 : index
    %13 = vector.load %arg6[%c0_8, %c0_9] : memref<8x128xf32, #tpu.memory_space<vmem>>, vector<8x128xf32>
    tpu.vector_store %arg6[%c0_8, %c0_9], %12 {strides = array<i32>} : memref<8x128xf32, #tpu.memory_space<vmem>>, vector<8x128xf32>,
    return
  }
  func.func @transform_0(%arg0: i32) -> (i32, i32) {
    %c0_i32 = arith.constant 0 : i32
    %c0_i32_0 = arith.constant 0 : i32
    return %c0_i32, %arg0 : i32, i32
  }
  func.func @transform_1(%arg0: i32) -> (i32, i32) {
    %c0_i32 = arith.constant 0 : i32
    %c0_i32_0 = arith.constant 0 : i32
    return %c0_i32, %arg0 : i32, i32
  }
  func.func @transform_2(%arg0: i32) -> (i32, i32) {
    %c0_i32 = arith.constant 0 : i32
    %c0_i32_0 = arith.constant 0 : i32
    return %c0_i32, %arg0 : i32, i32
  }
  func.func @transform_3(%arg0: i32) -> (i32, i32) {
    %c0_i32 = arith.constant 0 : i32
    %c0_i32_0 = arith.constant 0 : i32
    return %c0_i32, %arg0 : i32, i32
  }
  func.func @transform_4(%arg0: i32) -> i32 {
    %c0_i32 = arith.constant 0 : i32
    %c0_i32_0 = arith.constant 0 : i32
    return %c0_i32 : i32
  }
  func.func @transform_5(%arg0: i32) -> (i32, i32) {
    %c0_i32 = arith.constant 0 : i32
    %c0_i32_0 = arith.constant 0 : i32
    return %c0_i32, %arg0 : i32, i32
  }
}

</mosaic_0001>

<bundles_post_ra>
// kernel: tpu_custom_call.1
= control target key start
LH: loop header
LB: loop body
LE: loop exit
PB: predicated region body
PF: predicated region fallthrough
CT: control target
= control target key end

     0   :  { %11 = vsyncpa [#allocation4], 0  ;;  %s269_s0 = inlined_call_operand.hbm [shape: f32[8,128], index: 0, kind: input, shape index: {}]   ;;  %s270_s1 = inlined_call_operand.hbm [shape: f32[8,128], index: 1, kind: input, shape index: {}]   ;;  %s271_s2 = inlined_call_operand.hbm [shape: f32[8,128], index: 2, kind: input, shape index: {}]   ;;  %s272_s3 = inlined_call_operand.hbm [shape: f32[8,128], index: 3, kind: input, shape index: {}]   ;;  %s273_s4 = inlined_call_operand.<no memory space> [shape: f32[1], index: 4, kind: input, shape index: {}]   ;;  %s274_s5 = inlined_call_operand.hbm [shape: f32[8,128], index: 5, kind: output, shape index: {}]  }
   0x1   :  { %12 = vsyncpa [#allocation7], 0 }
   0x2   :  { %13 = vsyncpa [#allocation10], 0 }
   0x3   :  { %14 = vsyncpa [#allocation5], 0  ;;  %s216_s18 = smov [#allocation6]   ;;  %s217_s20 = smov [#allocation3]  }
   0x4   :  { %s31_s19 = sshll.u32 %s216_s18, 4  ;;  %s21_s21 = sshll.u32 %s217_s20, 4  ;;  %s32_s19 = int_to_ptr.vmem [resolvable:$true] %s31_s19  ;;  %s22_s21 = int_to_ptr.vmem [resolvable:$true] %s21_s21 }
   0x5   :  { %s116_s22 = scalar_lea.vmem %s32_s19, 128  ;;  %p121_p1 = scmp.lt.s32.totalorder %s32_s19, %s32_s19 }
   0x6   :  { %p117_p0 = scmp.ne.s32.totalorder %s32_s19, %s116_s22  ;;  %p122_p2 = scmp.lt.s32.totalorder %s116_s22, %s116_s22 }
   0x8   :  { %p123_p3 = por %p122_p2, %p121_p1 }
   0xa   :  { %p124_p4 = pnand %p123_p3, %p117_p0 }
   0xc   :  { %127 = shalt.err (!%p124_p4)
}
   0xd   :  { %34 = dma.hbm_to_vmem [thread:$0]  %s270_s1, 128, %s32_s19, [#allocation7]  }
   0xe   :  { %s136_s25 = scalar_lea.vmem %s22_s21, 128  ;;  %p141_p6 = scmp.lt.s32.totalorder %s22_s21, %s22_s21 }
   0xf   :  { %p137_p5 = scmp.ne.s32.totalorder %s22_s21, %s136_s25  ;;  %p142_p7 = scmp.lt.s32.totalorder %s136_s25, %s136_s25 }
  0x11   :  { %p143_p8 = por %p142_p7, %p141_p6 }
  0x13   :  { %p144_p9 = pnand %p143_p8, %p137_p5 }
  0x15   :  { %147 = shalt.err (!%p144_p9)
}
  0x16   :  { %24 = dma.hbm_to_vmem [thread:$0]  %s269_s0, 128, %s22_s21, [#allocation4]  }
  0x17   :  { %s218_s28 = smov [#allocation8]   ;;  %s219_s30 = smov [#allocation9]  }
  0x18   :  { %s41_s29 = sshll.u32 %s218_s28, 4  ;;  %s51_s6 = sshll.u32 %s219_s30, 4  ;;  %s42_s29 = int_to_ptr.vmem [resolvable:$true] %s41_s29  ;;  %s52_s6 = int_to_ptr.vmem [resolvable:$true] %s51_s6 }
  0x19   :  { %s156_s7 = scalar_lea.vmem %s42_s29, 128  ;;  %p161_p11 = scmp.lt.s32.totalorder %s42_s29, %s42_s29 }
  0x1a   :  { %p157_p10 = scmp.ne.s32.totalorder %s42_s29, %s156_s7  ;;  %p162_p12 = scmp.lt.s32.totalorder %s156_s7, %s156_s7 }
  0x1c   :  { %p163_p13 = por %p162_p12, %p161_p11 }
  0x1e   :  { %p164_p0 = pnand %p163_p13, %p157_p10 }
  0x20   :  { %167 = shalt.err (!%p164_p0)
}
  0x21   :  { %44 = dma.hbm_to_vmem [thread:$0]  %s271_s2, 128, %s42_s29, [#allocation7]  }
  0x22   :  { %s176_s9 = scalar_lea.vmem %s52_s6, 128  ;;  %p181_p2 = scmp.lt.s32.totalorder %s52_s6, %s52_s6 }
  0x23   :  { %p177_p1 = scmp.ne.s32.totalorder %s52_s6, %s176_s9  ;;  %p182_p3 = scmp.lt.s32.totalorder %s176_s9, %s176_s9 }
  0x25   :  { %p183_p4 = por %p182_p3, %p181_p2 }
  0x27   :  { %p184_p5 = pnand %p183_p4, %p177_p1 }
  0x29   :  { %187 = shalt.err (!%p184_p5)
}
  0x2a   :  { %54 = dma.hbm_to_vmem [thread:$0]  %s272_s3, 128, %s52_s6, [#allocation10]  }
  0x2b   :  { %208 = dma.done.wait [#allocation4], 128  }
  0x2c   :  { %209 = vsyncadd [#allocation4], 4294967168 }
  0x2d   :  { %210 = dma.done.wait [#allocation7], 256  }
  0x2e   :  { %211 = vsyncadd [#allocation7], 4294967040 }
  0x2f   :  { %212 = dma.done.wait [#allocation10], 128  }
  0x30   :  { %213 = vsyncadd [#allocation10], 4294967168  ;;  %s70_s2 = ssub.f32 0.0, %s273_s4  ;;  %v71_v0 = vld [vmem:[#allocation8] sm:$0xff]  ;;  %v72_v1 = vld [vmem:[#allocation9] sm:$0xff]  ;;  %s220_s3 = smov [#allocation11]  }
  0x31   :  { %v73_v2 = vsub.f32 %v71_v0, %v72_v1  ;;  %v79_v7 = vld [vmem:[#allocation6] sm:$0xff]  ;;  %v80_v8 = vld [vmem:[#allocation3] sm:$0xff]  ;;  %s90_s13 = sshll.u32 %s220_s3, 4  ;;  %s91_s13 = int_to_ptr.vmem [resolvable:$true] %s90_s13 }
  0x32   :  { %v75_v3 = vstv %s70_s2  ;;  %v81_v9 = vmul.f32 %v80_v8, %v79_v7  ;;  %s188_s14 = scalar_lea.vmem %s91_s13, 128  ;;  %p193_p7 = scmp.lt.s32.totalorder %s91_s13, %s91_s13 }
  0x33   :  { %v74_v4 = vand.u32 2147483647, %v73_v2  ;;  %p189_p6 = scmp.ne.s32.totalorder %s91_s13, %s188_s14  ;;  %p194_p8 = scmp.lt.s32.totalorder %s188_s14, %s188_s14 }
  0x35   :  { %v76_v5 = vmul.f32 %v75_v3, %v74_v4  ;;  %p195_p9 = por %p194_p8, %p193_p7 }
  0x37   :  { %v77_v6 = vmul.f32 1.442695, %v76_v5  ;;  %p196_p10 = pnand %p195_p9, %p189_p6 }
  0x39   :  { %106 = vpow2.f32 %v77_v6 }
  0x46   :  { %v107_v10 = vpop.eup %106 }
  0x47   :  { %v82_v11 = vmul.f32 %v107_v10, %v81_v9 }
  0x49   :  { %83 = vst [vmem:[#allocation11] sm:$0xff] %v82_v11 }
  0x4a   :  { %199 = shalt.err (!%p196_p10)
}
  0x4b   :  { %93 = dma.vmem_to_hbm [thread:$0]  %s91_s13, 128, %s274_s5, [#allocation5]  }
  0x4c   :  { %214 = dma.done.wait [#allocation5], 128  }
  0x4d   :  { %215 = vsyncadd [#allocation5], 4294967168 }
  0x4e   :  { %97 = vsyncpa [#allocation4], 1 }
  0x4f   :  { %98 = vsyncpa [#allocation7], 1 }
  0x50   :  { %99 = vsyncpa [#allocation10], 1 }
  0x51   :  { %100 = vsyncpa [#allocation5], 1 }

</bundles_post_ra>
